<compile_context>
chip_gen: v6e
topology: v6e:2x2x1
jax: 0.10.0
libtpu: 0.0.40
codegen_flags: <defaults>
</compile_context>

<pallas_src>
import functools
import math

import jax
import jax.numpy as jnp
from jax.experimental import pallas as pl
from jax.experimental.pallas import tpu as pltpu

NUM_ACTIONS = 9   # len(discrete_actions)
OBS_DIM = 3
OBS_PAD = 8       # layer-1 K zero-padded to the f32 sublane tile
HIDDEN = 128


def _round_up(x, m):
    return ((x + m - 1) // m) * m


def qnet_kernel(x_ref, w1_ref, b1_ref, w2_ref, b2_ref, w3_ref, b3_ref, o_ref):
    # ---- Layer 1: (tile_b, 8) @ (8, 128) on the MXU (K zero-padded 3 -> 8), f32.
    h1 = jnp.dot(x_ref[...], w1_ref[...],
                 preferred_element_type=jnp.float32) + b1_ref[...]
    h1 = jnp.maximum(h1, 0.0)

    # ---- Layer 2: (tile_b, 128) @ (128, 128).  Operands are bf16 when the params
    # were prepared with use_bf16=True; accumulation is always f32.
    h2 = jnp.dot(h1.astype(w2_ref.dtype), w2_ref[...],
                 preferred_element_type=jnp.float32) + b2_ref[...]
    h2 = jnp.maximum(h2, 0.0)

    # ---- Layer 3: N is padded to 128 in VMEM only (lane-dense MXU pass); just the
    # first NUM_ACTIONS lanes (+ bias) are written to the 9-wide HBM output.
    out = jnp.dot(h2.astype(w3_ref.dtype), w3_ref[...],
                  preferred_element_type=jnp.float32)
    o_ref[...] = (out[:, :NUM_ACTIONS] + b3_ref[...]).astype(o_ref.dtype)


def prepare_params(params, use_bf16=False):
    """One-time parameter prep (hoisted out of the forward pass):
       * w1 zero-padded (3,128) -> (8,128)    (aligned K for the MXU)
       * w3 zero-padded (128,9) -> (128,128)  (lane-dense MXU pass; HBM out stays 9-wide)
       * w2/w3 optionally cast to bf16 for the bf16 MXU throughput path
       Biases stay f32 (f32 accumulation)."""
    w1, b1, w2, b2, w3, b3 = params
    mxu_dtype = jnp.bfloat16 if use_bf16 else jnp.float32
    w1p = jnp.zeros((OBS_PAD, HIDDEN), jnp.float32).at[:OBS_DIM, :].set(w1)
    w3p = (jnp.zeros((HIDDEN, HIDDEN), mxu_dtype)
           .at[:, :NUM_ACTIONS].set(w3.astype(mxu_dtype)))
    return (w1p, b1, w2.astype(mxu_dtype), b2, w3p, b3)


@functools.partial(jax.jit, static_argnames=("tile_b",))
def qnet_forward(x, prepared_params, tile_b=1024):
    w1p, b1, w2, b2, w3p, b3 = prepared_params
    B = x.shape[0]

    # Batch tiling: for B <= tile_b split into (at least) two grid steps so both
    # v7x TensorCores get work; large batches keep the big tile to amortize the
    # per-grid-step overhead (~0.35 us / ~600 cycles).
    if B <= tile_b:
        tile_b = max(8, _round_up(math.ceil(B / 2), 8))
    b_pad = _round_up(B, tile_b)

    # One tiny fused pad: rows up to the grid, obs columns 3 -> 8.
    x = jnp.pad(x, ((0, b_pad - B), (0, OBS_PAD - OBS_DIM)))
    grid = (b_pad // tile_b,)

    def resident(shape):
        # Constant block index -> VMEM-resident, single-buffered (DMA'd once).
        return pl.BlockSpec(shape, lambda i: (0, 0), pipeline_mode=pl.Buffered(1))

    flops = 2 * b_pad * (OBS_PAD * HIDDEN + HIDDEN * HIDDEN + HIDDEN * HIDDEN)
    bytes_accessed = int(
        b_pad * OBS_PAD * 4                      # x (padded)
        + b_pad * NUM_ACTIONS * 4                # 9-wide output
        + w1p.size * w1p.dtype.itemsize
        + w2.size * w2.dtype.itemsize
        + w3p.size * w3p.dtype.itemsize
        + (b1.size + b2.size + b3.size) * 4)

    out = pl.pallas_call(
        qnet_kernel,
        out_shape=jax.ShapeDtypeStruct((b_pad, NUM_ACTIONS), jnp.float32),
        grid_spec=pltpu.PrefetchScalarGridSpec(
            num_scalar_prefetch=0,
            grid=grid,
            in_specs=[
                pl.BlockSpec((tile_b, OBS_PAD), lambda i: (i, 0)),  # x: batch-tiled
                resident((OBS_PAD, HIDDEN)),                        # w1 (K-padded)
                resident((1, HIDDEN)),                              # b1
                resident((HIDDEN, HIDDEN)),                         # w2
                resident((1, HIDDEN)),                              # b2
                resident((HIDDEN, HIDDEN)),                         # w3 (N-padded)
                resident((1, NUM_ACTIONS)),                         # b3
            ],
            # 9-wide output block: last dim == full array dim, so the (8,128)
            # rule is satisfied and the writeback DMA stays contiguous.
            out_specs=pl.BlockSpec((tile_b, NUM_ACTIONS), lambda i: (i, 0)),
        ),
        compiler_params=pltpu.CompilerParams(
            dimension_semantics=("parallel",),
            vmem_limit_bytes=32 * 1024 * 1024,
        ),
        cost_estimate=pl.CostEstimate(
            flops=flops, transcendentals=0, bytes_accessed=bytes_accessed),
    )(x, w1p, b1, w2, b2, w3p, b3)

    return out[:B]   # row-only slice (no lane slice needed anymore)


def init_params(key):
    """Deterministic init mirroring PyTorch nn.Linear default:
    U(-1/sqrt(fan_in), 1/sqrt(fan_in)) for both weight and bias."""
    def linear(key, fan_in, fan_out):
        kw, kb = jax.random.split(key)
        bound = 1.0 / jnp.sqrt(fan_in)
        w = jax.random.uniform(kw, (fan_in, fan_out), jnp.float32, -bound, bound)
        b = jax.random.uniform(kb, (1, fan_out), jnp.float32, -bound, bound)
        return w, b

    k1, k2, k3 = jax.random.split(key, 3)
    w1, b1 = linear(k1, OBS_DIM, HIDDEN)
    w2, b2 = linear(k2, HIDDEN, HIDDEN)
    w3, b3 = linear(k3, HIDDEN, NUM_ACTIONS)
    return (w1, b1, w2, b2, w3, b3)


def qnet_reference(x, params):
    w1, b1, w2, b2, w3, b3 = params
    h1 = jnp.maximum(x @ w1 + b1, 0.0)
    h2 = jnp.maximum(h1 @ w2 + b2, 0.0)
    return h2 @ w3 + b3


if __name__ == "__main__":
    key = jax.random.PRNGKey(0)
    kp, kx1, kx2 = jax.random.split(key, 3)
    params = init_params(kp)
    prepared_f32 = prepare_params(params, use_bf16=False)

    # Small batch: single 8-row tile.
    x_small = jax.random.normal(kx1, (8, OBS_DIM), jnp.float32)
    out_small = jax.block_until_ready(qnet_forward(x_small, prepared_f32))
    ref_small = qnet_reference(x_small, params)
    assert out_small.shape == (8, NUM_ACTIONS)
    assert jnp.allclose(out_small, ref_small, atol=1e-5, rtol=1e-5)

    # Larger batch: exercises a multi-step grid and row padding.
    x_big = jax.random.normal(kx2, (300, OBS_DIM), jnp.float32)
    out_big = jax.block_until_ready(qnet_forward(x_big, prepared_f32))
    ref_big = qnet_reference(x_big, params)
    assert out_big.shape == (300, NUM_ACTIONS)
    assert jnp.allclose(out_big, ref_big, atol=1e-5, rtol=1e-5)

    # Optional bf16 MXU throughput path (numerics differ from f32 — loose check).
    prepared_bf16 = prepare_params(params, use_bf16=True)
    out_bf16 = jax.block_until_ready(qnet_forward(x_big, prepared_bf16))
    assert out_bf16.shape == (300, NUM_ACTIONS)
    assert jnp.allclose(out_bf16, ref_big, atol=0.15, rtol=0.1)

    print("KERNEL_OK")
</pallas_src>

<mosaic_0001>
module attributes {stable_mosaic.version = 11 : i64} {
  func.func @qnet_kernel(%arg0: i32, %arg1: memref<8x8xf32, #tpu.memory_space<vmem>>, %arg2: memref<8x128xf32, #tpu.memory_space<vmem>>, %arg3: memref<1x128xf32, #tpu.memory_space<vmem>>, %arg4: memref<128x128xf32, #tpu.memory_space<vmem>>, %arg5: memref<1x128xf32, #tpu.memory_space<vmem>>, %arg6: memref<128x128xf32, #tpu.memory_space<vmem>>, %arg7: memref<1x9xf32, #tpu.memory_space<vmem>>, %arg8: memref<8x9xf32, #tpu.memory_space<vmem>>) attributes {dimension_semantics = [#tpu.dimension_semantics<parallel>], iteration_bounds = array<i64: 1>, scalar_prefetch = 0 : i64, scratch_operands = 0 : i64, tpu.core_type = #tpu.core_type<tc>, window_params = [{transform_indices = @transform_0, window_bounds = array<i64: 8, 8>}, {pipeline_mode = #tpu.pipeline_mode<synchronous>, transform_indices = @transform_1, window_bounds = array<i64: 8, 128>}, {pipeline_mode = #tpu.pipeline_mode<synchronous>, transform_indices = @transform_2, window_bounds = array<i64: 1, 128>}, {pipeline_mode = #tpu.pipeline_mode<synchronous>, transform_indices = @transform_3, window_bounds = array<i64: 128, 128>}, {pipeline_mode = #tpu.pipeline_mode<synchronous>, transform_indices = @transform_4, window_bounds = array<i64: 1, 128>}, {pipeline_mode = #tpu.pipeline_mode<synchronous>, transform_indices = @transform_5, window_bounds = array<i64: 128, 128>}, {pipeline_mode = #tpu.pipeline_mode<synchronous>, transform_indices = @transform_6, window_bounds = array<i64: 1, 9>}, {transform_indices = @transform_7, window_bounds = array<i64: 8, 9>}]} {
    %c0 = arith.constant 0 : index
    %c0_0 = arith.constant 0 : index
    %0 = vector.load %arg1[%c0, %c0_0] : memref<8x8xf32, #tpu.memory_space<vmem>>, vector<8x8xf32>
    %c0_1 = arith.constant 0 : index
    %c0_2 = arith.constant 0 : index
    %1 = vector.load %arg2[%c0_1, %c0_2] : memref<8x128xf32, #tpu.memory_space<vmem>>, vector<8x128xf32>
    %cst = arith.constant dense<0.000000e+00> : vector<8x128xf32>
    %2 = tpu.matmul %0, %1, %cst {dimension_numbers = #tpu.dot_dimension_numbers<[1], [0], [0], [1], [0, 0, 1, 1], [], []>} : vector<8x8xf32>, vector<8x128xf32>, vector<8x128xf32> -> vector<8x128xf32>
    %c0_3 = arith.constant 0 : index
    %c0_4 = arith.constant 0 : index
    %3 = vector.load %arg3[%c0_3, %c0_4] : memref<1x128xf32, #tpu.memory_space<vmem>>, vector<1x128xf32>
    %4 = vector.broadcast %3 : vector<1x128xf32> to vector<8x128xf32>
    %5 = arith.addf %2, %4 : vector<8x128xf32>
    %cst_5 = arith.constant 0.000000e+00 : f32
    %6 = vector.broadcast %cst_5 : f32 to vector<8x128xf32>
    %7 = arith.maximumf %5, %6 : vector<8x128xf32>
    %c0_6 = arith.constant 0 : index
    %c0_7 = arith.constant 0 : index
    %8 = vector.load %arg4[%c0_6, %c0_7] : memref<128x128xf32, #tpu.memory_space<vmem>>, vector<128x128xf32>
    %cst_8 = arith.constant dense<0.000000e+00> : vector<8x128xf32>
    %9 = tpu.matmul %7, %8, %cst_8 {dimension_numbers = #tpu.dot_dimension_numbers<[1], [0], [0], [1], [0, 0, 1, 1], [], []>} : vector<8x128xf32>, vector<128x128xf32>, vector<8x128xf32> -> vector<8x128xf32>
    %c0_9 = arith.constant 0 : index
    %c0_10 = arith.constant 0 : index
    %10 = vector.load %arg5[%c0_9, %c0_10] : memref<1x128xf32, #tpu.memory_space<vmem>>, vector<1x128xf32>
    %11 = vector.broadcast %10 : vector<1x128xf32> to vector<8x128xf32>
    %12 = arith.addf %9, %11 : vector<8x128xf32>
    %cst_11 = arith.constant 0.000000e+00 : f32
    %13 = vector.broadcast %cst_11 : f32 to vector<8x128xf32>
    %14 = arith.maximumf %12, %13 : vector<8x128xf32>
    %c0_12 = arith.constant 0 : index
    %c0_13 = arith.constant 0 : index
    %15 = vector.load %arg6[%c0_12, %c0_13] : memref<128x128xf32, #tpu.memory_space<vmem>>, vector<128x128xf32>
    %cst_14 = arith.constant dense<0.000000e+00> : vector<8x128xf32>
    %16 = tpu.matmul %14, %15, %cst_14 {dimension_numbers = #tpu.dot_dimension_numbers<[1], [0], [0], [1], [0, 0, 1, 1], [], []>} : vector<8x128xf32>, vector<128x128xf32>, vector<8x128xf32> -> vector<8x128xf32>
    %17 = vector.extract_strided_slice %16 {offsets = [0, 0], sizes = [8, 9], strides = [1, 1]} : vector<8x128xf32> to vector<8x9xf32>
    %c0_15 = arith.constant 0 : index
    %c0_16 = arith.constant 0 : index
    %18 = vector.load %arg7[%c0_15, %c0_16] : memref<1x9xf32, #tpu.memory_space<vmem>>, vector<1x9xf32>
    %19 = vector.broadcast %18 : vector<1x9xf32> to vector<8x9xf32>
    %20 = arith.addf %17, %19 : vector<8x9xf32>
    %c0_17 = arith.constant 0 : index
    %c0_18 = arith.constant 0 : index
    %21 = vector.load %arg8[%c0_17, %c0_18] : memref<8x9xf32, #tpu.memory_space<vmem>>, vector<8x9xf32>
    tpu.vector_store %arg8[%c0_17, %c0_18], %20 {strides = array<i32>} : memref<8x9xf32, #tpu.memory_space<vmem>>, vector<8x9xf32>,
    return
  }
  func.func @transform_0(%arg0: i32) -> (i32, i32) {
    %c0_i32 = arith.constant 0 : i32
    %c0_i32_0 = arith.constant 0 : i32
    return %arg0, %c0_i32 : i32, i32
  }
  func.func @transform_1(%arg0: i32) -> (i32, i32) {
    %c0_i32 = arith.constant 0 : i32
    %c0_i32_0 = arith.constant 0 : i32
    %c0_i32_1 = arith.constant 0 : i32
    return %c0_i32, %c0_i32_0 : i32, i32
  }
  func.func @transform_2(%arg0: i32) -> (i32, i32) {
    %c0_i32 = arith.constant 0 : i32
    %c0_i32_0 = arith.constant 0 : i32
    %c0_i32_1 = arith.constant 0 : i32
    return %c0_i32, %c0_i32_0 : i32, i32
  }
  func.func @transform_3(%arg0: i32) -> (i32, i32) {
    %c0_i32 = arith.constant 0 : i32
    %c0_i32_0 = arith.constant 0 : i32
    %c0_i32_1 = arith.constant 0 : i32
    return %c0_i32, %c0_i32_0 : i32, i32
  }
  func.func @transform_4(%arg0: i32) -> (i32, i32) {
    %c0_i32 = arith.constant 0 : i32
    %c0_i32_0 = arith.constant 0 : i32
    %c0_i32_1 = arith.constant 0 : i32
    return %c0_i32, %c0_i32_0 : i32, i32
  }
  func.func @transform_5(%arg0: i32) -> (i32, i32) {
    %c0_i32 = arith.constant 0 : i32
    %c0_i32_0 = arith.constant 0 : i32
    %c0_i32_1 = arith.constant 0 : i32
    return %c0_i32, %c0_i32_0 : i32, i32
  }
  func.func @transform_6(%arg0: i32) -> (i32, i32) {
    %c0_i32 = arith.constant 0 : i32
    %c0_i32_0 = arith.constant 0 : i32
    %c0_i32_1 = arith.constant 0 : i32
    return %c0_i32, %c0_i32_0 : i32, i32
  }
  func.func @transform_7(%arg0: i32) -> (i32, i32) {
    %c0_i32 = arith.constant 0 : i32
    %c0_i32_0 = arith.constant 0 : i32
    return %arg0, %c0_i32 : i32, i32
  }
}

</mosaic_0001>

<bundles_post_ra>
// kernel: qnet_forward.1
= control target key start
LH: loop header
LB: loop body
LE: loop exit
PB: predicated region body
PF: predicated region fallthrough
CT: control target
= control target key end

     0   :  { %12 = vsyncpa [#allocation3], 0  ;;  %s643_s0 = inlined_call_operand.vmem [shape: f32[8,8], index: 0, kind: input, shape index: {}]   ;;  %s644_s1 = inlined_call_operand.vmem [shape: f32[8,128], index: 1, kind: input, shape index: {}]   ;;  %s645_s2 = inlined_call_operand.vmem [shape: f32[1,128], index: 2, kind: input, shape index: {}]   ;;  %s646_s3 = inlined_call_operand.hbm [shape: f32[128,128], index: 3, kind: input, shape index: {}]   ;;  %s647_s4 = inlined_call_operand.vmem [shape: f32[1,128], index: 4, kind: input, shape index: {}]   ;;  %s648_s5 = inlined_call_operand.hbm [shape: f32[128,128], index: 5, kind: input, shape index: {}]   ;;  %s649_s6 = inlined_call_operand.vmem [shape: f32[1,9], index: 6, kind: input, shape index: {}]   ;;  %s650_s7 = inlined_call_operand.hbm [shape: f32[8,9], index: 7, kind: output, shape index: {}]  }
   0x1   :  { %13 = vsyncpa [#allocation6], 0 }
   0x2   :  { %14 = vsyncpa [#allocation4], 0  ;;  %s533_s24 = smov [#allocation2]  }
   0x3   :  { %s26_s25 = sshll.u32 %s533_s24, 4  ;;  %s27_s25 = int_to_ptr.vmem [resolvable:$true] %s26_s25 }
   0x4   :  { %s475_s26 = scalar_lea.vmem %s27_s25, 2048  ;;  %p480_p1 = scmp.lt.s32.totalorder %s27_s25, %s27_s25 }
   0x5   :  { %p476_p0 = scmp.ne.s32.totalorder %s27_s25, %s475_s26  ;;  %p481_p2 = scmp.lt.s32.totalorder %s475_s26, %s475_s26 }
   0x7   :  { %p482_p3 = por %p481_p2, %p480_p1 }
   0x9   :  { %p483_p4 = pnand %p482_p3, %p476_p0 }
   0xb   :  { %486 = shalt.err (!%p483_p4)
}
   0xc   :  { %s534_s27 = smov 128   ;;  %s535_s28 = smov 8  }
   0xd   :  { %32 = dma.hbm_to_vmem [thread:$0]  %s646_s3, 2048, %s27_s25, [#allocation3], %s534_s27, %s534_s27, %s535_s28  }
   0xe   :  { %s536_s8 = smov [#allocation5]  }
   0xf   :  { %s40_s9 = sshll.u32 %s536_s8, 4  ;;  %s41_s9 = int_to_ptr.vmem [resolvable:$true] %s40_s9 }
  0x10   :  { %s495_s10 = scalar_lea.vmem %s41_s9, 2048  ;;  %p500_p6 = scmp.lt.s32.totalorder %s41_s9, %s41_s9 }
  0x11   :  { %p496_p5 = scmp.ne.s32.totalorder %s41_s9, %s495_s10  ;;  %p501_p7 = scmp.lt.s32.totalorder %s495_s10, %s495_s10 }
  0x13   :  { %p502_p8 = por %p501_p7, %p500_p6 }
  0x15   :  { %p503_p9 = pnand %p502_p8, %p496_p5 }
  0x17   :  { %506 = shalt.err (!%p503_p9)
}
  0x18   :  { %46 = dma.hbm_to_vmem [thread:$0]  %s648_s5, 2048, %s41_s9, [#allocation6], %s534_s27, %s534_s27, %s535_s28  }
  0x19   :  { %527 = dma.done.wait [#allocation3], 2048  }
  0x1a   :  { %528 = vsyncadd [#allocation3], 4294965248 }
  0x1b   :  { %529 = dma.done.wait [#allocation6], 2048  }
  0x1c   :  { %530 = vsyncadd [#allocation6], 4294965248  ;;  %v537_v0 = vmov 0.0   ;;  %vm538_vm0 = vmmov 0   ;;  %vm64_vm1 = vcmask 64512   ;;  %v56_v1 = vld [vmem:[%s644_s1] sm:$0xff] }
  0x1d   :  { %385 = vmatprep.subr.mxu0 %v537_v0  ;;  %387 = vmatprep.mubr.msk.f32.mxu0 %vm538_vm0, %v537_v0  ;;  %v55_v2 = vld [vmem:[%s643_s0] sm:$0xff]  ;;  %v154_v3 = vld [vmem:[#allocation2 + $0x78] sm:$0xff]  ;;  %v153_v4 = vld [vmem:[#allocation2 + $0x70] sm:$0xff]  ;;  %s539_s18 = smov [#allocation7]   ;;  %vm327_vm2 = vcmask 72704  }
  0x1e   :  { %390 = vmatprep.subr.mxu1 %v537_v0  ;;  %422 = vmatprep.mubr.msk.f32.mxu1 %vm538_vm0, %v537_v0  ;;  %v152_v5 = vld [vmem:[#allocation2 + $0x68] sm:$0xff]  ;;  %v151_v6 = vld [vmem:[#allocation2 + $0x60] sm:$0xff]  ;;  %v150_v7 = vld [vmem:[#allocation2 + $0x58] sm:$0xff]  ;;  %s335_s19 = sshll.u32 %s539_s18, 4  ;;  %s336_s19 = int_to_ptr.vmem [resolvable:$true] %s335_s19 }
  0x1f   :  { %386 = vmatpush3.msra.mxu0 %v56_v1  ;;  %391 = vmatpush3.msra.mxu1 %v154_v3  ;;  %v149_v8 = vld [vmem:[#allocation2 + $0x50] sm:$0xff]  ;;  %v148_v9 = vld [vmem:[#allocation2 + $0x48] sm:$0xff]  ;;  %v147_v10 = vld [vmem:[#allocation2 + $0x40] sm:$0xff]  ;;  %s507_s20 = scalar_lea.vmem %s336_s19, 128  ;;  %p512_p11 = scmp.lt.s32.totalorder %s336_s19, %s336_s19 }
  0x20   :  { %388 = vmatmul.mubr.msk.f32.vlgmr.msra.gmra.mxu0 %vm64_vm1, %v55_v2  ;;  %392 = vmatprep.subr.mxu1 %v537_v0  ;;  %v146_v11 = vld [vmem:[#allocation2 + $0x38] sm:$0xff]  ;;  %v145_v12 = vld [vmem:[#allocation2 + $0x30] sm:$0xff]  ;;  %v144_v13 = vld [vmem:[#allocation2 + $0x28] sm:$0xff]  ;;  %p508_p10 = scmp.ne.s32.totalorder %s336_s19, %s507_s20  ;;  %p513_p12 = scmp.lt.s32.totalorder %s507_s20, %s507_s20 }
  0x21   :  { %393 = vmatpush3.msra.mxu1 %v153_v4  ;;  %425 = vmatprep.subr.mxu0 %v537_v0  ;;  %v143_v14 = vld [vmem:[#allocation2 + $0x20] sm:$0xff]  ;;  %v142_v15 = vld [vmem:[#allocation2 + $0x18] sm:$0xff]  ;;  %v141_v16 = vld [vmem:[#allocation2 + $0x10] sm:$0xff] }
  0x22   :  { %394 = vmatprep.subr.mxu1 %v537_v0  ;;  %457 = vmatprep.mubr.msk.f32.mxu0 %vm538_vm0, %v537_v0  ;;  %v140_v17 = vld [vmem:[#allocation2 + $0x8] sm:$0xff]  ;;  %v139_v18 = vld [vmem:[#allocation2] sm:$0xff]  ;;  %v248_v19 = vld [vmem:[#allocation5 + $0x78] sm:$0xff]  ;;  %p514_p13 = por %p513_p12, %p512_p11 }
  0x23   :  { %395 = vmatpush3.msra.mxu1 %v152_v5  ;;  %v247_v20 = vld [vmem:[#allocation5 + $0x70] sm:$0xff]  ;;  %426 = vmatpush3.msra.mxu0 %v248_v19  ;;  %v246_v21 = vld [vmem:[#allocation5 + $0x68] sm:$0xff]  ;;  %v245_v22 = vld [vmem:[#allocation5 + $0x60] sm:$0xff] }
  0x24   :  { %396 = vmatprep.subr.mxu1 %v537_v0  ;;  %427 = vmatprep.subr.mxu0 %v537_v0  ;;  %v244_v23 = vld [vmem:[#allocation5 + $0x58] sm:$0xff]  ;;  %v243_v24 = vld [vmem:[#allocation5 + $0x50] sm:$0xff]  ;;  %v242_v25 = vld [vmem:[#allocation5 + $0x48] sm:$0xff]  ;;  %p515_p0 = pnand %p514_p13, %p508_p10 }
  0x25   :  { %397 = vmatpush3.msra.mxu1 %v151_v6  ;;  %428 = vmatpush3.msra.mxu0 %v247_v20  ;;  %v241_v26 = vld [vmem:[#allocation5 + $0x40] sm:$0xff]  ;;  %v240_v27 = vld [vmem:[#allocation5 + $0x38] sm:$0xff]  ;;  %v239_v28 = vld [vmem:[#allocation5 + $0x30] sm:$0xff] }
  0x26   :  { %398 = vmatprep.subr.mxu1 %v537_v0  ;;  %429 = vmatprep.subr.mxu0 %v537_v0  ;;  %v238_v29 = vld [vmem:[#allocation5 + $0x28] sm:$0xff]  ;;  %v237_v30 = vld [vmem:[#allocation5 + $0x20] sm:$0xff]  ;;  %v236_v31 = vld [vmem:[#allocation5 + $0x18] sm:$0xff] }
  0x27   :  { %399 = vmatpush3.msra.mxu1 %v150_v7  ;;  %430 = vmatpush3.msra.mxu0 %v246_v21  ;;  %v345_v32 = vld [vmem:[%s645_s2] ss:$0 sm:$0xff]  ;;  %v235_v37 = vld [vmem:[#allocation5 + $0x10] sm:$0xff]  ;;  %v234_v38 = vld [vmem:[#allocation5 + $0x8] sm:$0xff] }
  0x28   :  { %400 = vmatprep.subr.mxu1 %v537_v0  ;;  %431 = vmatprep.subr.mxu0 %v537_v0  ;;  %v233_v39 = vld [vmem:[#allocation5] sm:$0xff] }
  0x29   :  { %401 = vmatpush3.msra.mxu1 %v149_v8  ;;  %432 = vmatpush3.msra.mxu0 %v245_v22  ;;  %v347_v40 = vld [vmem:[%s647_s4] ss:$0 sm:$0xff] }
  0x2a   :  { %402 = vmatprep.subr.mxu1 %v537_v0  ;;  %433 = vmatprep.subr.mxu0 %v537_v0  ;;  %v348_v45 = vld [vmem:[%s649_s6] ss:$0 sm:$0xff] }
  0x2b   :  { %403 = vmatpush3.msra.mxu1 %v148_v9  ;;  %434 = vmatpush3.msra.mxu0 %v244_v23 }
  0x2c   :  { %404 = vmatprep.subr.mxu1 %v537_v0  ;;  %435 = vmatprep.subr.mxu0 %v537_v0 }
  0x2d   :  { %405 = vmatpush3.msra.mxu1 %v147_v10  ;;  %436 = vmatpush3.msra.mxu0 %v243_v24 }
  0x2e   :  { %406 = vmatprep.subr.mxu1 %v537_v0  ;;  %437 = vmatprep.subr.mxu0 %v537_v0 }
  0x2f   :  { %407 = vmatpush3.msra.mxu1 %v146_v11  ;;  %438 = vmatpush3.msra.mxu0 %v242_v25 }
  0x30   :  { %408 = vmatprep.subr.mxu1 %v537_v0  ;;  %439 = vmatprep.subr.mxu0 %v537_v0 }
  0x31   :  { %409 = vmatpush3.msra.mxu1 %v145_v12  ;;  %440 = vmatpush3.msra.mxu0 %v241_v26 }
  0x32   :  { %410 = vmatprep.subr.mxu1 %v537_v0  ;;  %441 = vmatprep.subr.mxu0 %v537_v0 }
  0x33   :  { %411 = vmatpush3.msra.mxu1 %v144_v13  ;;  %442 = vmatpush3.msra.mxu0 %v240_v27 }
  0x34   :  { %412 = vmatprep.subr.mxu1 %v537_v0  ;;  %443 = vmatprep.subr.mxu0 %v537_v0 }
  0x35   :  { %413 = vmatpush3.msra.mxu1 %v143_v14  ;;  %444 = vmatpush3.msra.mxu0 %v239_v28 }
  0x36   :  { %414 = vmatprep.subr.mxu1 %v537_v0  ;;  %445 = vmatprep.subr.mxu0 %v537_v0 }
  0x37   :  { %415 = vmatpush3.msra.mxu1 %v142_v15  ;;  %446 = vmatpush3.msra.mxu0 %v238_v29 }
  0x38   :  { %416 = vmatprep.subr.mxu1 %v537_v0  ;;  %447 = vmatprep.subr.mxu0 %v537_v0 }
  0x39   :  { %417 = vmatpush3.msra.mxu1 %v141_v16  ;;  %448 = vmatpush3.msra.mxu0 %v237_v30 }
  0x3a   :  { %418 = vmatprep.subr.mxu1 %v537_v0  ;;  %449 = vmatprep.subr.mxu0 %v537_v0 }
  0x3b   :  { %419 = vmatpush3.msra.mxu1 %v140_v17  ;;  %450 = vmatpush3.msra.mxu0 %v236_v31 }
  0x3c   :  { %420 = vmatprep.subr.mxu1 %v537_v0  ;;  %451 = vmatprep.subr.mxu0 %v537_v0 }
  0x3d   :  { %421 = vmatpush3.msra.mxu1 %v139_v18  ;;  %452 = vmatpush3.msra.mxu0 %v235_v37 }
  0x3e   :  { %453 = vmatprep.subr.mxu0 %v537_v0 }
  0x3f   :  { %454 = vmatpush3.msra.mxu0 %v234_v38 }
  0x40   :  { %455 = vmatprep.subr.mxu0 %v537_v0 }
  0x41   :  { %456 = vmatpush3.msra.mxu0 %v233_v39 }
  0xe0   :  { %v134_v33 = vpop.f32.mrf.mxu0 }
  0xe1   :  { %v135_v34 = vadd.f32 %v345_v32, %v134_v33 }
  0xe2   :  { %v389_v35 = vpop.f32.mrf.mxu0 }
  0xe3   :  { %v138_v36 = vmax.f32 %v135_v34, 0.0 }
  0xe5   :  { %423 = vmatmul.mubr.f32.vlgmr.msra.gmra.mxu1 %v138_v36 }
 0x1a5   :  { %v228_v41 = vpop.f32.mrf.mxu1 }
 0x1a6   :  { %v229_v42 = vadd.f32 %v347_v40, %v228_v41 }
 0x1a7   :  { %v424_v43 = vpop.f32.mrf.mxu1 }
 0x1a8   :  { %v232_v44 = vmax.f32 %v229_v42, 0.0 }
 0x1aa   :  { %458 = vmatmul.mubr.f32.vlgmr.msra.gmra.mxu0 %v232_v44 }
 0x26a   :  { %v315_v46 = vpop.f32.mrf.mxu0 }
 0x26b   :  { %v326_v47 = vadd.f32 %v348_v45, %v315_v46 }
 0x26c   :  { %v459_v48 = vpop.f32.mrf.mxu0 }
 0x26d   :  { %328 = vst.msk [vmem:[#allocation7] sm:$0xff] %vm327_vm2, %v326_v47 }
 0x26e   :  { %518 = shalt.err (!%p515_p0)
}
 0x26f   :  { %338 = dma.vmem_to_hbm [thread:$0]  %s336_s19, 128, %s650_s7, [#allocation4]  }
 0x270   :  { %531 = dma.done.wait [#allocation4], 128  }
 0x271   :  { %532 = vsyncadd [#allocation4], 4294967168 }
 0x272   :  { %342 = vsyncpa [#allocation3], 1 }
 0x273   :  { %343 = vsyncpa [#allocation6], 1 }
 0x274   :  { %344 = vsyncpa [#allocation4], 1 }

</bundles_post_ra>
